<compile_context>
chip_gen: v7x
topology: tpu7x:2x2x1
jax: 0.10.0
libtpu: 0.0.40
codegen_flags: <defaults>
</compile_context>

<pallas_src>
import functools

import jax
import jax.numpy as jnp
import numpy as np
from jax import lax
from jax.experimental import pallas as pl
from jax.experimental.pallas import tpu as pltpu


def _resnet_block_kernel(xp_ref, w1_ref, w2_ref, bias_ref, o_ref, h_ref):
    # xp_ref  : (B, L + 2*PAD, C)  pre-padded input block (compute dtype)
    # w1_ref  : (K*C, C)  conv1 weights, taps stacked on the contraction axis,
    #                     BN1 scale folded into the output channels
    # w2_ref  : (K*C, C)  conv2 weights, BN2 scale folded in
    # bias_ref: (2, C)    [bn1 bias, bn2 bias], f32
    # o_ref   : (B, L, C) output block
    # h_ref   : (B, L + 2*PAD, C) VMEM scratch holding conv2's padded input
    B, Lp, C = xp_ref.shape
    L = o_ref.shape[1]
    PAD = (Lp - L) // 2
    K = w1_ref.shape[0] // C
    M = B * L

    def conv(src_ref, w_ref):
        # im2col: the K shifted windows are read from the ref at static offsets
        # and concatenated on the lane axis -> a single MXU matmul per conv with
        # contraction depth K*C.
        windows = [src_ref[:, k:k + L, :] for k in range(K)]
        a = jnp.concatenate(windows, axis=-1).reshape(M, K * C)
        return jnp.dot(a, w_ref[...], preferred_element_type=jnp.float32)

    bias1 = bias_ref[0][None, :]
    bias2 = bias_ref[1][None, :]

    # conv1 -> BN1 (scale already folded into w1) -> ReLU; epilogue in f32.
    h = jnp.maximum(conv(xp_ref, w1_ref) + bias1, 0.0)            # (M, C) f32

    # Stage the ReLU output into a padded scratch so conv2 also reads shifted
    # windows from a ref (no in-kernel pad/concat copies along the sublane axis).
    if PAD > 0:
        zpad = jnp.zeros((B, PAD, C), h_ref.dtype)
        h_ref[:, 0:PAD, :] = zpad
        h_ref[:, PAD + L:Lp, :] = zpad
    h_ref[:, PAD:PAD + L, :] = h.reshape(B, L, C).astype(h_ref.dtype)

    residual = xp_ref[:, PAD:PAD + L, :].reshape(M, C).astype(jnp.float32)
    out = conv(h_ref, w2_ref) + bias2 + residual                  # f32
    out = jnp.maximum(out, 0.0)
    o_ref[...] = out.reshape(B, L, C).astype(o_ref.dtype)


def _choose_block_batch(n, length, target_rows=256):
    """Largest divisor of n keeping B*L near the MXU row target (<= ~2x target)."""
    best = 1
    for b in range(1, n + 1):
        if n % b == 0 and b * length <= max(2 * target_rows, length):
            best = b
    # If we collapsed to a single grid step, give back a second step (v7x has two
    # TensorCores) as long as it doesn't drop below the row target.
    if n // best == 1 and n >= 2:
        half = best // 2
        if half >= 1 and n % half == 0 and half * length >= target_rows:
            best = half
    return best


def resnet_block_pallas(x_ncl, w1, w2,
                        g1, b1, m1, v1,
                        g2, b2, m2, v2,
                        eps=1e-5,
                        compute_dtype=jnp.bfloat16,
                        block_batch=None):
    """Eval-mode ResNetBlock forward.

    x_ncl: (N, C, L) float (PyTorch layout); w: (C_out, C_in, K), bias-free conv.
    compute_dtype: matmul-operand dtype (bf16 recommended on v6e/v7x); accumulation
    and the BN/ReLU/residual epilogue stay in f32.
    """
    N, C, L = x_ncl.shape
    K = w1.shape[-1]
    PAD = K // 2     # matches nn.Conv1d(padding=K//2); exact 'same' only for odd K
    Lp = L + 2 * PAD

    # Fold eval-mode BatchNorm: y = s*conv(x) + (b - m*s). Fold s into the conv
    # output channels so the kernel epilogue is bias + ReLU only.
    s1 = g1 / jnp.sqrt(v1 + eps)
    s2 = g2 / jnp.sqrt(v2 + eps)
    biases = jnp.stack([b1 - m1 * s1, b2 - m2 * s2], axis=0).astype(jnp.float32)

    # (C_out, C_in, K) -> (K, C_in, C_out) -> stacked (K*C_in, C_out); cast once.
    w1_s = (jnp.transpose(w1 * s1[:, None, None], (2, 1, 0))
            .reshape(K * C, C).astype(compute_dtype))
    w2_s = (jnp.transpose(w2 * s2[:, None, None], (2, 1, 0))
            .reshape(K * C, C).astype(compute_dtype))

    # NCL -> NLC (channels on the lane axis); pre-pad L so the kernel reads the K
    # shifted conv windows directly from the ref.
    x_nlc = jnp.transpose(x_ncl, (0, 2, 1)).astype(compute_dtype)
    xp = jnp.pad(x_nlc, ((0, 0), (PAD, PAD), (0, 0)))

    B = block_batch if block_batch is not None else _choose_block_batch(N, L)
    assert N % B == 0, (N, B)
    grid = (N // B,)

    # VMEM budget: double-buffered activation blocks + single-buffered weights +
    # scratch; keep the limit within the smallest generation budget (v7x: 64 MiB).
    in_bytes = np.dtype(compute_dtype).itemsize
    out_bytes = np.dtype(x_ncl.dtype).itemsize
    vmem_est = (2 * B * Lp * C * in_bytes          # input block, double-buffered
                + 2 * B * L * C * out_bytes        # output block, double-buffered
                + 2 * K * C * C * in_bytes         # stacked weights, single-buffered
                + 2 * C * 4                        # biases
                + B * Lp * C * in_bytes)           # conv2 scratch
    vmem_limit = int(min(max(4 * vmem_est, 32 * 2 ** 20), 64 * 2 ** 20))

    const = lambda n: (0, 0)   # weights / biases: same block every grid step
    out_nlc = pl.pallas_call(
        _resnet_block_kernel,
        out_shape=jax.ShapeDtypeStruct((N, L, C), x_ncl.dtype),
        grid_spec=pltpu.PrefetchScalarGridSpec(
            num_scalar_prefetch=0,
            grid=grid,
            in_specs=[
                pl.BlockSpec((B, Lp, C), lambda n: (n, 0, 0)),
                pl.BlockSpec((K * C, C), const, pipeline_mode=pl.Buffered(1)),
                pl.BlockSpec((K * C, C), const, pipeline_mode=pl.Buffered(1)),
                pl.BlockSpec((2, C), const, pipeline_mode=pl.Buffered(1)),
            ],
            out_specs=pl.BlockSpec((B, L, C), lambda n: (n, 0, 0)),
            scratch_shapes=[pltpu.VMEM((B, Lp, C), compute_dtype)],
        ),
        compiler_params=pltpu.CompilerParams(
            dimension_semantics=("parallel",),
            vmem_limit_bytes=vmem_limit),
    )(xp, w1_s, w2_s, biases)

    # Back to PyTorch NCL layout.
    return jnp.transpose(out_nlc, (0, 2, 1))


def resnet_block_reference(x_ncl, w1, w2, g1, b1, m1, v1, g2, b2, m2, v2, eps=1e-5):
    """Pure-JAX reference matching PyTorch eval-mode semantics."""
    dn = ('NCH', 'OIH', 'NCH')
    pad = w1.shape[-1] // 2

    def conv(x, w):
        return lax.conv_general_dilated(x, w, window_strides=(1,),
                                        padding=[(pad, pad)],
                                        dimension_numbers=dn)

    def bn(x, g, b, m, v):
        return (x - m[None, :, None]) / jnp.sqrt(v[None, :, None] + eps) \
            * g[None, :, None] + b[None, :, None]

    out = conv(x_ncl, w1)
    out = bn(out, g1, b1, m1, v1)
    out = jnp.maximum(out, 0.0)
    out = conv(out, w2)
    out = bn(out, g2, b2, m2, v2)
    out = out + x_ncl
    return jnp.maximum(out, 0.0)


if __name__ == "__main__":
    # Small shapes consistent with the module (in_channels scaled down to 128).
    N, C, L, K = 2, 128, 16, 3

    key = jax.random.PRNGKey(0)
    keys = jax.random.split(key, 8)

    x = jax.random.normal(keys[0], (N, C, L), dtype=jnp.float32)
    # Conv weights: (C_out, C_in, K), no bias (matches nn.Conv1d(bias=False)).
    w1 = jax.random.normal(keys[1], (C, C, K), dtype=jnp.float32) / jnp.sqrt(C * K)
    w2 = jax.random.normal(keys[2], (C, C, K), dtype=jnp.float32) / jnp.sqrt(C * K)
    # BatchNorm params (eval mode, deterministic non-trivial values).
    g1 = 1.0 + 0.1 * jax.random.normal(keys[3], (C,), dtype=jnp.float32)
    b1 = 0.1 * jax.random.normal(keys[4], (C,), dtype=jnp.float32)
    m1 = 0.05 * jax.random.normal(keys[5], (C,), dtype=jnp.float32)
    v1 = 1.0 + 0.1 * jax.nn.softplus(jax.random.normal(keys[6], (C,), dtype=jnp.float32))
    g2 = jnp.ones((C,), jnp.float32)
    b2 = jnp.zeros((C,), jnp.float32)
    m2 = jnp.zeros((C,), jnp.float32)
    v2 = jnp.ones((C,), jnp.float32)

    args = (x, w1, w2, g1, b1, m1, v1, g2, b2, m2, v2)
    ref = resnet_block_reference(*args)

    # Exact-semantics check: f32 matmul operands, tight tolerance.
    out_f32 = jax.block_until_ready(
        jax.jit(functools.partial(resnet_block_pallas,
                                  compute_dtype=jnp.float32))(*args))
    assert out_f32.shape == (N, C, L)
    err_f32 = float(jnp.max(jnp.abs(out_f32 - ref)))
    assert jnp.allclose(out_f32, ref, atol=1e-3, rtol=1e-3), err_f32

    # Fast path: bf16 MXU operands + f32 accumulation (v6e/v7x recommendation).
    out_bf16 = jax.block_until_ready(
        jax.jit(functools.partial(resnet_block_pallas,
                                  compute_dtype=jnp.bfloat16))(*args))
    err_bf16 = float(jnp.max(jnp.abs(out_bf16 - ref)))
    assert jnp.allclose(out_bf16, ref, atol=5e-2, rtol=5e-2), err_bf16

    print("KERNEL_OK")
</pallas_src>

<mosaic_0001>
module attributes {stable_mosaic.version = 11 : i64} {
  func.func @_resnet_block_kernel(%arg0: i32, %arg1: memref<2x18x128xf32, #tpu.memory_space<vmem>>, %arg2: memref<384x128xf32, #tpu.memory_space<vmem>>, %arg3: memref<384x128xf32, #tpu.memory_space<vmem>>, %arg4: memref<2x128xf32, #tpu.memory_space<vmem>>, %arg5: memref<2x16x128xf32, #tpu.memory_space<vmem>>, %arg6: memref<2x18x128xf32, #tpu.memory_space<vmem>>) attributes {dimension_semantics = [#tpu.dimension_semantics<parallel>], iteration_bounds = array<i64: 1>, scalar_prefetch = 0 : i64, scratch_operands = 1 : i64, tpu.core_type = #tpu.core_type<tc>, window_params = [{transform_indices = @transform_0, window_bounds = array<i64: 2, 18, 128>}, {pipeline_mode = #tpu.pipeline_mode<synchronous>, transform_indices = @transform_1, window_bounds = array<i64: 384, 128>}, {pipeline_mode = #tpu.pipeline_mode<synchronous>, transform_indices = @transform_2, window_bounds = array<i64: 384, 128>}, {pipeline_mode = #tpu.pipeline_mode<synchronous>, transform_indices = @transform_3, window_bounds = array<i64: 2, 128>}, {transform_indices = @transform_4, window_bounds = array<i64: 2, 16, 128>}]} {
    %c0 = arith.constant 0 : index
    %c0_0 = arith.constant 0 : index
    %0 = vector.load %arg4[%c0, %c0_0] : memref<2x128xf32, #tpu.memory_space<vmem>>, vector<1x128xf32>
    %1 = vector.shape_cast %0 : vector<1x128xf32> to vector<128xf32>
    %2 = vector.shape_cast %1 : vector<128xf32> to vector<1x128xf32>
    %c1 = arith.constant 1 : index
    %c0_1 = arith.constant 0 : index
    %3 = vector.load %arg4[%c1, %c0_1] : memref<2x128xf32, #tpu.memory_space<vmem>>, vector<1x128xf32>
    %4 = vector.shape_cast %3 : vector<1x128xf32> to vector<128xf32>
    %5 = vector.shape_cast %4 : vector<128xf32> to vector<1x128xf32>
    %c0_2 = arith.constant 0 : index
    %c0_3 = arith.constant 0 : index
    %c0_4 = arith.constant 0 : index
    %6 = vector.load %arg1[%c0_2, %c0_3, %c0_4] : memref<2x18x128xf32, #tpu.memory_space<vmem>>, vector<2x16x128xf32>
    %c0_5 = arith.constant 0 : index
    %c1_6 = arith.constant 1 : index
    %c0_7 = arith.constant 0 : index
    %7 = vector.load %arg1[%c0_5, %c1_6, %c0_7] : memref<2x18x128xf32, #tpu.memory_space<vmem>>, vector<2x16x128xf32>
    %c0_8 = arith.constant 0 : index
    %c2 = arith.constant 2 : index
    %c0_9 = arith.constant 0 : index
    %8 = vector.load %arg1[%c0_8, %c2, %c0_9] : memref<2x18x128xf32, #tpu.memory_space<vmem>>, vector<2x16x128xf32>
    %9 = tpu.concatenate %6, %7, %8 in 2 : vector<2x16x128xf32>, vector<2x16x128xf32>, vector<2x16x128xf32> -> vector<2x16x384xf32>
    %10 = vector.shape_cast %9 : vector<2x16x384xf32> to vector<32x384xf32>
    %c0_10 = arith.constant 0 : index
    %c0_11 = arith.constant 0 : index
    %11 = vector.load %arg2[%c0_10, %c0_11] : memref<384x128xf32, #tpu.memory_space<vmem>>, vector<384x128xf32>
    %cst = arith.constant dense<0.000000e+00> : vector<32x128xf32>
    %12 = tpu.matmul %10, %11, %cst {dimension_numbers = #tpu.dot_dimension_numbers<[1], [0], [0], [1], [0, 0, 1, 1], [], []>} : vector<32x384xf32>, vector<384x128xf32>, vector<32x128xf32> -> vector<32x128xf32>
    %13 = vector.broadcast %2 : vector<1x128xf32> to vector<32x128xf32>
    %14 = arith.addf %12, %13 : vector<32x128xf32>
    %cst_12 = arith.constant 0.000000e+00 : f32
    %15 = vector.broadcast %cst_12 : f32 to vector<32x128xf32>
    %16 = arith.maximumf %14, %15 : vector<32x128xf32>
    %cst_13 = arith.constant 0.000000e+00 : f32
    %17 = vector.broadcast %cst_13 : f32 to vector<2x1x128xf32>
    %c0_14 = arith.constant 0 : index
    %c0_15 = arith.constant 0 : index
    %c0_16 = arith.constant 0 : index
    %18 = vector.load %arg6[%c0_14, %c0_15, %c0_16] : memref<2x18x128xf32, #tpu.memory_space<vmem>>, vector<2x1x128xf32>
    tpu.vector_store %arg6[%c0_14, %c0_15, %c0_16], %17 {strides = array<i32>} : memref<2x18x128xf32, #tpu.memory_space<vmem>>, vector<2x1x128xf32>,
    %c0_17 = arith.constant 0 : index
    %c17 = arith.constant 17 : index
    %c0_18 = arith.constant 0 : index
    %19 = vector.load %arg6[%c0_17, %c17, %c0_18] : memref<2x18x128xf32, #tpu.memory_space<vmem>>, vector<2x1x128xf32>
    tpu.vector_store %arg6[%c0_17, %c17, %c0_18], %17 {strides = array<i32>} : memref<2x18x128xf32, #tpu.memory_space<vmem>>, vector<2x1x128xf32>,
    %20 = vector.shape_cast %16 : vector<32x128xf32> to vector<2x16x128xf32>
    %c0_19 = arith.constant 0 : index
    %c1_20 = arith.constant 1 : index
    %c0_21 = arith.constant 0 : index
    %21 = vector.load %arg6[%c0_19, %c1_20, %c0_21] : memref<2x18x128xf32, #tpu.memory_space<vmem>>, vector<2x16x128xf32>
    tpu.vector_store %arg6[%c0_19, %c1_20, %c0_21], %20 {strides = array<i32>} : memref<2x18x128xf32, #tpu.memory_space<vmem>>, vector<2x16x128xf32>,
    %c0_22 = arith.constant 0 : index
    %c1_23 = arith.constant 1 : index
    %c0_24 = arith.constant 0 : index
    %22 = vector.load %arg1[%c0_22, %c1_23, %c0_24] : memref<2x18x128xf32, #tpu.memory_space<vmem>>, vector<2x16x128xf32>
    %23 = vector.shape_cast %22 : vector<2x16x128xf32> to vector<32x128xf32>
    %c0_25 = arith.constant 0 : index
    %c0_26 = arith.constant 0 : index
    %c0_27 = arith.constant 0 : index
    %24 = vector.load %arg6[%c0_25, %c0_26, %c0_27] : memref<2x18x128xf32, #tpu.memory_space<vmem>>, vector<2x16x128xf32>
    %c0_28 = arith.constant 0 : index
    %c1_29 = arith.constant 1 : index
    %c0_30 = arith.constant 0 : index
    %25 = vector.load %arg6[%c0_28, %c1_29, %c0_30] : memref<2x18x128xf32, #tpu.memory_space<vmem>>, vector<2x16x128xf32>
    %c0_31 = arith.constant 0 : index
    %c2_32 = arith.constant 2 : index
    %c0_33 = arith.constant 0 : index
    %26 = vector.load %arg6[%c0_31, %c2_32, %c0_33] : memref<2x18x128xf32, #tpu.memory_space<vmem>>, vector<2x16x128xf32>
    %27 = tpu.concatenate %24, %25, %26 in 2 : vector<2x16x128xf32>, vector<2x16x128xf32>, vector<2x16x128xf32> -> vector<2x16x384xf32>
    %28 = vector.shape_cast %27 : vector<2x16x384xf32> to vector<32x384xf32>
    %c0_34 = arith.constant 0 : index
    %c0_35 = arith.constant 0 : index
    %29 = vector.load %arg3[%c0_34, %c0_35] : memref<384x128xf32, #tpu.memory_space<vmem>>, vector<384x128xf32>
    %cst_36 = arith.constant dense<0.000000e+00> : vector<32x128xf32>
    %30 = tpu.matmul %28, %29, %cst_36 {dimension_numbers = #tpu.dot_dimension_numbers<[1], [0], [0], [1], [0, 0, 1, 1], [], []>} : vector<32x384xf32>, vector<384x128xf32>, vector<32x128xf32> -> vector<32x128xf32>
    %31 = vector.broadcast %5 : vector<1x128xf32> to vector<32x128xf32>
    %32 = arith.addf %30, %31 : vector<32x128xf32>
    %33 = arith.addf %32, %23 : vector<32x128xf32>
    %cst_37 = arith.constant 0.000000e+00 : f32
    %34 = vector.broadcast %cst_37 : f32 to vector<32x128xf32>
    %35 = arith.maximumf %33, %34 : vector<32x128xf32>
    %36 = vector.shape_cast %35 : vector<32x128xf32> to vector<2x16x128xf32>
    %c0_38 = arith.constant 0 : index
    %c0_39 = arith.constant 0 : index
    %c0_40 = arith.constant 0 : index
    %37 = vector.load %arg5[%c0_38, %c0_39, %c0_40] : memref<2x16x128xf32, #tpu.memory_space<vmem>>, vector<2x16x128xf32>
    tpu.vector_store %arg5[%c0_38, %c0_39, %c0_40], %36 {strides = array<i32>} : memref<2x16x128xf32, #tpu.memory_space<vmem>>, vector<2x16x128xf32>,
    return
  }
  func.func @transform_0(%arg0: i32) -> (i32, i32, i32) {
    %c0_i32 = arith.constant 0 : i32
    %c0_i32_0 = arith.constant 0 : i32
    %c0_i32_1 = arith.constant 0 : i32
    return %arg0, %c0_i32, %c0_i32_0 : i32, i32, i32
  }
  func.func @transform_1(%arg0: i32) -> (i32, i32) {
    %c0_i32 = arith.constant 0 : i32
    %c0_i32_0 = arith.constant 0 : i32
    %c0_i32_1 = arith.constant 0 : i32
    return %c0_i32, %c0_i32_0 : i32, i32
  }
  func.func @transform_2(%arg0: i32) -> (i32, i32) {
    %c0_i32 = arith.constant 0 : i32
    %c0_i32_0 = arith.constant 0 : i32
    %c0_i32_1 = arith.constant 0 : i32
    return %c0_i32, %c0_i32_0 : i32, i32
  }
  func.func @transform_3(%arg0: i32) -> (i32, i32) {
    %c0_i32 = arith.constant 0 : i32
    %c0_i32_0 = arith.constant 0 : i32
    %c0_i32_1 = arith.constant 0 : i32
    return %c0_i32, %c0_i32_0 : i32, i32
  }
  func.func @transform_4(%arg0: i32) -> (i32, i32, i32) {
    %c0_i32 = arith.constant 0 : i32
    %c0_i32_0 = arith.constant 0 : i32
    %c0_i32_1 = arith.constant 0 : i32
    return %arg0, %c0_i32, %c0_i32_0 : i32, i32, i32
  }
}

</mosaic_0001>

<bundles_post_ra>
// kernel: resnet_block_pallas.1
= control target key start
LH: loop header
LB: loop body
LE: loop exit
PB: predicated region body
PF: predicated region fallthrough
CT: control target
= control target key end

     0   :  { %s1281_s0 = inlined_call_operand.vmem [shape: f32[2,18,128], index: 0, kind: input, shape index: {}]   ;;  %s1282_s1 = inlined_call_operand.vmem [shape: f32[384,128], index: 1, kind: input, shape index: {}]   ;;  %s1283_s2 = inlined_call_operand.vmem [shape: f32[384,128], index: 2, kind: input, shape index: {}]   ;;  %s1284_s3 = inlined_call_operand.vmem [shape: f32[2,128], index: 3, kind: input, shape index: {}]   ;;  %s1285_s4 = inlined_call_operand.hbm [shape: f32[2,16,128], index: 4, kind: output, shape index: {}]  }
   0x1   :  { %v48_v0 = vld [vmem:[%s1282_s1 + $0x80] sm:$0xff]  ;;  %v49_v1 = vld [vmem:[%s1282_s1 + $0x88] sm:$0xff]  ;;  %v50_v9 = vld [vmem:[%s1282_s1 + $0x90] sm:$0xff] }
   0x2   :  { %v32_v2 = vld [vmem:[%s1282_s1] sm:$0xff]  ;;  %v738_v3 = vpack.c.bf16 %v49_v1, %v48_v0  ;;  %v33_v4 = vld [vmem:[%s1282_s1 + $0x8] sm:$0xff]  ;;  %v51_v10 = vld [vmem:[%s1282_s1 + $0x98] sm:$0xff] }
   0x3   :  { %v64_v5 = vld [vmem:[%s1282_s1 + $0x100] sm:$0xff]  ;;  %v65_v6 = vld [vmem:[%s1282_s1 + $0x108] sm:$0xff]  ;;  %v740_v7 = vpack.c.bf16 %v33_v4, %v32_v2  ;;  %v34_v11 = vld [vmem:[%s1282_s1 + $0x10] sm:$0xff]  ;;  %v742_v12 = vpack.c.bf16 %v51_v10, %v50_v9 }
   0x4   :  { %v770_v8 = vpack.c.bf16 %v65_v6, %v64_v5  ;;  %739 = vmatprep.subr.bf16.mxu0 %v738_v3  ;;  %v35_v13 = vld [vmem:[%s1282_s1 + $0x18] sm:$0xff]  ;;  %v66_v14 = vld [vmem:[%s1282_s1 + $0x110] sm:$0xff]  ;;  %v52_v18 = vld [vmem:[%s1282_s1 + $0xa0] sm:$0xff] }
   0x5   :  { %v67_v15 = vld [vmem:[%s1282_s1 + $0x118] sm:$0xff]  ;;  %741 = vmatpush3.bf16.msra.mxu0 %v740_v7  ;;  %v744_v16 = vpack.c.bf16 %v35_v13, %v34_v11  ;;  %v53_v19 = vld [vmem:[%s1282_s1 + $0xa8] sm:$0xff]  ;;  %v36_v20 = vld [vmem:[%s1282_s1 + $0x20] sm:$0xff] }
   0x6   :  { %771 = vmatprep.subr.bf16.mxu1 %v770_v8  ;;  %v774_v17 = vpack.c.bf16 %v67_v15, %v66_v14  ;;  %743 = vmatprep.subr.bf16.mxu0 %v742_v12  ;;  %v746_v21 = vpack.c.bf16 %v53_v19, %v52_v18  ;;  %v37_v22 = vld [vmem:[%s1282_s1 + $0x28] sm:$0xff]  ;;  %v68_v23 = vld [vmem:[%s1282_s1 + $0x120] sm:$0xff]  ;;  %v54_v26 = vld [vmem:[%s1282_s1 + $0xb0] sm:$0xff] }
   0x7   :  { %773 = vmatpush3.bf16.msra.mxu1 %v770_v8  ;;  %v69_v24 = vld [vmem:[%s1282_s1 + $0x128] sm:$0xff]  ;;  %v55_v27 = vld [vmem:[%s1282_s1 + $0xb8] sm:$0xff]  ;;  %v70_v28 = vld [vmem:[%s1282_s1 + $0x130] sm:$0xff]  ;;  %v748_v30 = vpack.c.bf16 %v37_v22, %v36_v20 }
   0x8   :  { %775 = vmatprep.subr.bf16.mxu1 %v774_v17  ;;  %v778_v25 = vpack.c.bf16 %v69_v24, %v68_v23  ;;  %v71_v29 = vld [vmem:[%s1282_s1 + $0x138] sm:$0xff]  ;;  %v750_v31 = vpack.c.bf16 %v55_v27, %v54_v26  ;;  %v38_v32 = vld [vmem:[%s1282_s1 + $0x30] sm:$0xff]  ;;  %v56_v35 = vld [vmem:[%s1282_s1 + $0xc0] sm:$0xff] }
   0x9   :  { %745 = vmatpush3.bf16.msra.mxu0 %v744_v16  ;;  %v39_v33 = vld [vmem:[%s1282_s1 + $0x38] sm:$0xff]  ;;  %v782_v34 = vpack.c.bf16 %v71_v29, %v70_v28  ;;  %v57_v36 = vld [vmem:[%s1282_s1 + $0xc8] sm:$0xff]  ;;  %v72_v37 = vld [vmem:[%s1282_s1 + $0x140] sm:$0xff] }
   0xa   :  { %747 = vmatprep.subr.bf16.mxu0 %v746_v21  ;;  %v73_v38 = vld [vmem:[%s1282_s1 + $0x148] sm:$0xff]  ;;  %v752_v39 = vpack.c.bf16 %v39_v33, %v38_v32  ;;  %v754_v40 = vpack.c.bf16 %v57_v36, %v56_v35  ;;  %v40_v41 = vld [vmem:[%s1282_s1 + $0x40] sm:$0xff]  ;;  %v58_v44 = vld [vmem:[%s1282_s1 + $0xd0] sm:$0xff] }
   0xb   :  { %777 = vmatpush3.bf16.msra.mxu1 %v774_v17  ;;  %v41_v42 = vld [vmem:[%s1282_s1 + $0x48] sm:$0xff]  ;;  %v786_v43 = vpack.c.bf16 %v73_v38, %v72_v37  ;;  %v59_v45 = vld [vmem:[%s1282_s1 + $0xd8] sm:$0xff]  ;;  %v74_v46 = vld [vmem:[%s1282_s1 + $0x150] sm:$0xff] }
   0xc   :  { %779 = vmatprep.subr.bf16.mxu1 %v778_v25  ;;  %v75_v47 = vld [vmem:[%s1282_s1 + $0x158] sm:$0xff]  ;;  %v1028_v48 = vld [vmem:[%s1281_s0 + $0x1] sm:$0xff]  ;;  %v756_v49 = vpack.c.bf16 %v41_v42, %v40_v41  ;;  %v758_v51 = vpack.c.bf16 %v59_v45, %v58_v44  ;;  %v42_v52 = vld [vmem:[%s1282_s1 + $0x50] sm:$0xff] }
   0xd   :  { %749 = vmatpush3.bf16.msra.mxu0 %v748_v30  ;;  %148 = vmatprep.mubr.f32.mxu0 %v1028_v48  ;;  %v28_v50 = vld [vmem:[%s1281_s0 + $0x2] sm:$0xff]  ;;  %v43_v53 = vld [vmem:[%s1282_s1 + $0x58] sm:$0xff]  ;;  %v790_v54 = vpack.c.bf16 %v75_v47, %v74_v46  ;;  %v62_v0 = vld [vmem:[%s1282_s1 + $0xf0] sm:$0xff] }
   0xe   :  { %751 = vmatprep.subr.bf16.mxu0 %v750_v31  ;;  %v60_v55 = vld [vmem:[%s1282_s1 + $0xe0] sm:$0xff]  ;;  %v61_v56 = vld [vmem:[%s1282_s1 + $0xe8] sm:$0xff]  ;;  %694 = vmatprep.mubr.f32.mxu1 %v28_v50  ;;  %v760_v59 = vpack.c.bf16 %v43_v53, %v42_v52  ;;  %v63_v1 = vld [vmem:[%s1282_s1 + $0xf8] sm:$0xff] }
   0xf   :  { %781 = vmatpush3.bf16.msra.mxu1 %v778_v25  ;;  %v76_v57 = vld [vmem:[%s1282_s1 + $0x160] sm:$0xff]  ;;  %v77_v58 = vld [vmem:[%s1282_s1 + $0x168] sm:$0xff]  ;;  %v762_v60 = vpack.c.bf16 %v61_v56, %v60_v55  ;;  %v78_v2 = vld [vmem:[%s1282_s1 + $0x170] sm:$0xff]  ;;  %v766_v5 = vpack.c.bf16 %v63_v1, %v62_v0 }
  0x10   :  { %783 = vmatprep.subr.bf16.mxu1 %v782_v34  ;;  %v44_v61 = vld [vmem:[%s1282_s1 + $0x60] sm:$0xff]  ;;  %v45_v62 = vld [vmem:[%s1282_s1 + $0x68] sm:$0xff]  ;;  %v794_v63 = vpack.c.bf16 %v77_v58, %v76_v57  ;;  %v79_v3 = vld [vmem:[%s1282_s1 + $0x178] sm:$0xff] }
  0x11   :  { %753 = vmatpush3.bf16.msra.mxu0 %v752_v39  ;;  %v764_v4 = vpack.c.bf16 %v45_v62, %v44_v61  ;;  %v46_v6 = vld [vmem:[%s1282_s1 + $0x70] sm:$0xff]  ;;  %v47_v7 = vld [vmem:[%s1282_s1 + $0x78] sm:$0xff]  ;;  %v798_v8 = vpack.c.bf16 %v79_v3, %v78_v2  ;;  %v298_v9 = vld [vmem:[%s1283_s2 + $0x80] sm:$0xff] }
  0x12   :  { %755 = vmatprep.subr.bf16.mxu0 %v754_v40  ;;  %v299_v10 = vld [vmem:[%s1283_s2 + $0x88] sm:$0xff] }
  0x13   :  { %785 = vmatpush3.bf16.msra.mxu1 %v782_v34 }
  0x14   :  { %787 = vmatprep.subr.bf16.mxu1 %v786_v43 }
  0x15   :  { %757 = vmatpush3.bf16.msra.mxu0 %v756_v49 }
  0x16   :  { %759 = vmatprep.subr.bf16.mxu0 %v758_v51 }
  0x17   :  { %789 = vmatpush3.bf16.msra.mxu1 %v786_v43 }
  0x18   :  { %791 = vmatprep.subr.bf16.mxu1 %v790_v54 }
  0x19   :  { %761 = vmatpush3.bf16.msra.mxu0 %v760_v59 }
  0x1a   :  { %763 = vmatprep.subr.bf16.mxu0 %v762_v60 }
  0x1b   :  { %793 = vmatpush3.bf16.msra.mxu1 %v790_v54 }
  0x1c   :  { %795 = vmatprep.subr.bf16.mxu1 %v794_v63 }
  0x1d   :  { %9 = vsyncpa [#allocation4], 0  ;;  %v314_v11 = vld [vmem:[%s1283_s2 + $0x100] sm:$0xff]  ;;  %v315_v12 = vld [vmem:[%s1283_s2 + $0x108] sm:$0xff]  ;;  %765 = vmatpush3.bf16.msra.mxu0 %v764_v4  ;;  %v768_v13 = vpack.c.bf16 %v47_v7, %v46_v6  ;;  %v802_v14 = vpack.c.bf16 %v299_v10, %v298_v9 }
  0x1e   :  { %767 = vmatprep.subr.bf16.mxu0 %v766_v5  ;;  %v282_v15 = vld [vmem:[%s1283_s2] sm:$0xff]  ;;  %v283_v16 = vld [vmem:[%s1283_s2 + $0x8] sm:$0xff]  ;;  %v834_v17 = vpack.c.bf16 %v315_v12, %v314_v11  ;;  %v300_v18 = vld [vmem:[%s1283_s2 + $0x90] sm:$0xff] }
  0x1f   :  { %797 = vmatpush3.bf16.msra.mxu1 %v794_v63  ;;  %v301_v19 = vld [vmem:[%s1283_s2 + $0x98] sm:$0xff]  ;;  %v20_v20 = vld [vmem:[%s1281_s0] sm:$0xff]  ;;  %v316_v21 = vld [vmem:[%s1283_s2 + $0x110] sm:$0xff]  ;;  %v804_v25 = vpack.c.bf16 %v283_v16, %v282_v15 }
  0x20   :  { %799 = vmatprep.subr.bf16.mxu1 %v798_v8  ;;  %v317_v22 = vld [vmem:[%s1283_s2 + $0x118] sm:$0xff]  ;;  %v1112_v23 = vld [vmem:[%s1281_s0 + $0x9] sm:$0xff]  ;;  %v806_v27 = vpack.c.bf16 %v301_v19, %v300_v18  ;;  %v302_v30 = vld [vmem:[%s1283_s2 + $0xa0] sm:$0xff] }
  0x21   :  { %769 = vmatpush3.bf16.msra.mxu0 %v768_v13  ;;  %v29_v24 = vld [vmem:[%s1281_s0 + $0xa] sm:$0xff]  ;;  %v30_v26 = vld [vmem:[%s1281_s0 + $0x1a] sm:$0xff]  ;;  %v838_v32 = vpack.c.bf16 %v317_v22, %v316_v21  ;;  %v31_v37 = vld [vmem:[%s1281_s0 + $0x22] sm:$0xff] }
  0x22   :  { %803 = vmatprep.subr.bf16.mxu0 %v802_v14  ;;  %v284_v28 = vld [vmem:[%s1283_s2 + $0x10] sm:$0xff]  ;;  %v285_v29 = vld [vmem:[%s1283_s2 + $0x18] sm:$0xff]  ;;  %v303_v31 = vld [vmem:[%s1283_s2 + $0xa8] sm:$0xff] }
  0x23   :  { %801 = vmatpush3.bf16.msra.mxu1 %v798_v8  ;;  %v21_v33 = vld [vmem:[%s1281_s0 + $0x8] sm:$0xff]  ;;  %v318_v34 = vld [vmem:[%s1283_s2 + $0x120] sm:$0xff]  ;;  %v808_v38 = vpack.c.bf16 %v285_v29, %v284_v28  ;;  %v810_v39 = vpack.c.bf16 %v303_v31, %v302_v30  ;;  %v304_v42 = vld [vmem:[%s1283_s2 + $0xb0] sm:$0xff] }
  0x24   :  { %835 = vmatprep.subr.bf16.mxu1 %v834_v17  ;;  %149 = vmatmul.mubr.f32.vlgmr.msra.gmra.mrb[0].mxu0 %v20_v20  ;;  %v319_v35 = vld [vmem:[%s1283_s2 + $0x128] sm:$0xff]  ;;  %v1145_v36 = vld [vmem:[%s1281_s0 + $0x19] sm:$0xff]  ;;  %v288_v51 = vld [vmem:[%s1283_s2 + $0x30] sm:$0xff] }
  0x25   :  { %153 = vmatprep.mubr.f32.mxu0 %v1112_v23  ;;  %805 = vmatpush3.bf16.msra.mxu0 %v804_v25  ;;  %v286_v40 = vld [vmem:[%s1283_s2 + $0x20] sm:$0xff]  ;;  %v287_v41 = vld [vmem:[%s1283_s2 + $0x28] sm:$0xff]  ;;  %v305_v43 = vld [vmem:[%s1283_s2 + $0xb8] sm:$0xff]  ;;  %v842_v44 = vpack.c.bf16 %v319_v35, %v318_v34 }
  0x26   :  { %695 = vmatmul.mubr.f32.vlgmr.msra.gmra.mrb[0].mxu1 %v29_v24  ;;  %807 = vmatprep.subr.bf16.mxu0 %v806_v27  ;;  %v22_v45 = vld [vmem:[%s1281_s0 + $0x18] sm:$0xff]  ;;  %v1169_v46 = vld [vmem:[%s1281_s0 + $0x21] sm:$0xff]  ;;  %v812_v47 = vpack.c.bf16 %v287_v41, %v286_v40  ;;  %v814_v49 = vpack.c.bf16 %v305_v43, %v304_v42  ;;  %v320_v57 = vld [vmem:[%s1283_s2 + $0x130] sm:$0xff] }
  0x27   :  { %697 = vmatprep.mubr.f32.mxu1 %v30_v26  ;;  %837 = vmatpush3.bf16.msra.mxu1 %v834_v17  ;;  %v23_v50 = vld [vmem:[%s1281_s0 + $0x20] sm:$0xff]  ;;  %v289_v52 = vld [vmem:[%s1283_s2 + $0x38] sm:$0xff]  ;;  %v307_v55 = vld [vmem:[%s1283_s2 + $0xc8] sm:$0xff]  ;;  %v894_v17 = vmov 0.0  }
  0x28   :  { %154 = vmatmul.mubr.f32.gmra.mrb[2].mxu0 %v21_v33  ;;  %839 = vmatprep.subr.bf16.mxu1 %v838_v32  ;;  %v816_v53 = vpack.c.bf16 %v289_v52, %v288_v51  ;;  %v306_v54 = vld [vmem:[%s1283_s2 + $0xc0] sm:$0xff]  ;;  %v321_v58 = vld [vmem:[%s1283_s2 + $0x138] sm:$0xff]  ;;  %v291_v61 = vld [vmem:[%s1283_s2 + $0x48] sm:$0xff]  ;;  %258 = vst [vmem:[#allocation2] sm:$0x1] %v894_v17 }
  0x29   :  { %158 = vmatprep.mubr.f32.mxu0 %v1145_v36  ;;  %809 = vmatpush3.bf16.msra.mxu0 %v808_v38  ;;  %v818_v56 = vpack.c.bf16 %v307_v55, %v306_v54  ;;  %v290_v59 = vld [vmem:[%s1283_s2 + $0x40] sm:$0xff]  ;;  %v846_v60 = vpack.c.bf16 %v321_v58, %v320_v57  ;;  %v308_v63 = vld [vmem:[%s1283_s2 + $0xd0] sm:$0xff]  ;;  %v309_v0 = vld [vmem:[%s1283_s2 + $0xd8] sm:$0xff]  ;;  %259 = vst [vmem:[#allocation2 + $0x18] sm:$0x1] %v894_v17 }
  0x2a   :  { %698 = vmatmul.mubr.f32.gmra.mrb[2].mxu1 %v31_v37  ;;  %811 = vmatprep.subr.bf16.mxu0 %v810_v39  ;;  %v820_v62 = vpack.c.bf16 %v291_v61, %v290_v59  ;;  %v822_v1 = vpack.c.bf16 %v309_v0, %v308_v63  ;;  %v322_v2 = vld [vmem:[%s1283_s2 + $0x140] sm:$0xff]  ;;  %v323_v3 = vld [vmem:[%s1283_s2 + $0x148] sm:$0xff]  ;;  %v292_v4 = vld [vmem:[%s1283_s2 + $0x50] sm:$0xff]  ;;  %260 = vst [vmem:[#allocation2 + $0x11] sm:$0x1] %v894_v17 }
  0x2b   :  { %841 = vmatpush3.bf16.msra.mxu1 %v838_v32  ;;  %v850_v5 = vpack.c.bf16 %v323_v3, %v322_v2  ;;  %v293_v6 = vld [vmem:[%s1283_s2 + $0x58] sm:$0xff]  ;;  %v310_v8 = vld [vmem:[%s1283_s2 + $0xe0] sm:$0xff]  ;;  %v311_v9 = vld [vmem:[%s1283_s2 + $0xe8] sm:$0xff]  ;;  %261 = vst [vmem:[#allocation2 + $0x29] sm:$0x1] %v894_v17 }
  0x2c   :  { %159 = vmatmul.mubr.f32.gmra.mrb[4].mxu0 %v22_v45  ;;  %843 = vmatprep.subr.bf16.mxu1 %v842_v44  ;;  %v824_v7 = vpack.c.bf16 %v293_v6, %v292_v4  ;;  %v826_v10 = vpack.c.bf16 %v311_v9, %v310_v8  ;;  %v324_v11 = vld [vmem:[%s1283_s2 + $0x150] sm:$0xff]  ;;  %v325_v12 = vld [vmem:[%s1283_s2 + $0x158] sm:$0xff]  ;;  %v294_v13 = vld [vmem:[%s1283_s2 + $0x60] sm:$0xff] }
  0x2d   :  { %163 = vmatprep.mubr.f32.mxu0 %v1169_v46  ;;  %813 = vmatpush3.bf16.msra.mxu0 %v812_v47  ;;  %v854_v14 = vpack.c.bf16 %v325_v12, %v324_v11  ;;  %v295_v15 = vld [vmem:[%s1283_s2 + $0x68] sm:$0xff]  ;;  %v312_v18 = vld [vmem:[%s1283_s2 + $0xf0] sm:$0xff]  ;;  %v313_v19 = vld [vmem:[%s1283_s2 + $0xf8] sm:$0xff] }
  0x2e   :  { %815 = vmatprep.subr.bf16.mxu0 %v814_v49  ;;  %v828_v16 = vpack.c.bf16 %v295_v15, %v294_v13  ;;  %v830_v20 = vpack.c.bf16 %v313_v19, %v312_v18  ;;  %v326_v21 = vld [vmem:[%s1283_s2 + $0x160] sm:$0xff]  ;;  %v327_v22 = vld [vmem:[%s1283_s2 + $0x168] sm:$0xff]  ;;  %v296_v24 = vld [vmem:[%s1283_s2 + $0x70] sm:$0xff] }
  0x2f   :  { %845 = vmatpush3.bf16.msra.mxu1 %v842_v44  ;;  %v858_v25 = vpack.c.bf16 %v327_v22, %v326_v21  ;;  %v297_v26 = vld [vmem:[%s1283_s2 + $0x78] sm:$0xff]  ;;  %v328_v28 = vld [vmem:[%s1283_s2 + $0x170] sm:$0xff]  ;;  %v532_v34 = vld [vmem:[%s1284_s3] ss:$0 sm:$0xff] }
  0x30   :  { %164 = vmatmul.mubr.f32.gmra.mrb[6].mxu0 %v23_v50  ;;  %847 = vmatprep.subr.bf16.mxu1 %v846_v60  ;;  %v832_v27 = vpack.c.bf16 %v297_v26, %v296_v24  ;;  %v329_v29 = vld [vmem:[%s1283_s2 + $0x178] sm:$0xff]  ;;  %v533_v9 = vld [vmem:[%s1284_s3 + $0x1] ss:$0 sm:$0xff]  ;;  %s895_s3 = smov [#allocation3]  }
  0x31   :  { %817 = vmatpush3.bf16.msra.mxu0 %v816_v53  ;;  %v862_v30 = vpack.c.bf16 %v329_v29, %v328_v28  ;;  %s521_s19 = sshll.u32 %s895_s3, 4  ;;  %s522_s19 = int_to_ptr.vmem [resolvable:$true] %s521_s19 }
  0x32   :  { %819 = vmatprep.subr.bf16.mxu0 %v818_v56  ;;  %s870_s20 = scalar_lea.vmem %s522_s19, 512  ;;  %p875_p1 = scmp.lt.s32.totalorder %s522_s19, %s522_s19 }
  0x33   :  { %849 = vmatpush3.bf16.msra.mxu1 %v846_v60  ;;  %p871_p0 = scmp.ne.s32.totalorder %s522_s19, %s870_s20  ;;  %p876_p2 = scmp.lt.s32.totalorder %s870_s20, %s870_s20 }
  0x34   :  { %851 = vmatprep.subr.bf16.mxu1 %v850_v5 }
  0x35   :  { %821 = vmatpush3.bf16.msra.mxu0 %v820_v62  ;;  %p877_p3 = por %p876_p2, %p875_p1 }
  0x36   :  { %823 = vmatprep.subr.bf16.mxu0 %v822_v1 }
  0x37   :  { %853 = vmatpush3.bf16.msra.mxu1 %v850_v5  ;;  %p878_p4 = pnand %p877_p3, %p871_p0 }
  0x38   :  { %855 = vmatprep.subr.bf16.mxu1 %v854_v14 }
  0x39   :  { %825 = vmatpush3.bf16.msra.mxu0 %v824_v7 }
  0x3a   :  { %827 = vmatprep.subr.bf16.mxu0 %v826_v10 }
  0x3b   :  { %857 = vmatpush3.bf16.msra.mxu1 %v854_v14 }
  0x3c   :  { %859 = vmatprep.subr.bf16.mxu1 %v858_v25 }
  0x3d   :  { %829 = vmatpush3.bf16.msra.mxu0 %v828_v16 }
  0x3e   :  { %831 = vmatprep.subr.bf16.mxu0 %v830_v20 }
  0x3f   :  { %861 = vmatpush3.bf16.msra.mxu1 %v858_v25 }
  0x40   :  { %863 = vmatprep.subr.bf16.mxu1 %v862_v30 }
  0x41   :  { %833 = vmatpush3.bf16.msra.mxu0 %v832_v27 }
  0x43   :  { %865 = vmatpush3.bf16.msra.mxu1 %v862_v30 }
  0xf7   :  { %v566_v31 = vpop.f32.mrb[0].mxu0 }
  0xf8   :  { %v567_v32 = vpop.f32.mrb[1].mxu0 }
  0xf9   :  { %v696_v33 = vpop.f32.mrb[0].mxu1  ;;  %v568_v35 = vadd.f32 %v567_v32, %v566_v31 }
  0xfa   :  { %v235_v37 = vpop.f32.mrb[1].mxu1 }
  0xfb   :  { %v569_v38 = vpop.f32.mrb[2].mxu0  ;;  %v151_v39 = vadd.f32 %v568_v35, %v532_v34 }
  0xfc   :  { %v570_v40 = vpop.f32.mrb[3].mxu0 }
  0xfd   :  { %v699_v41 = vpop.f32.mrb[2].mxu1  ;;  %v236_v42 = vadd.f32 %v235_v37, %v151_v39  ;;  %v571_v43 = vadd.f32 %v570_v40, %v569_v38 }
  0xfe   :  { %v245_v44 = vpop.f32.mrb[3].mxu1 }
  0xff   :  { %v254_v45 = vmax.f32 %v236_v42, 0.0  ;;  %v156_v47 = vadd.f32 %v571_v43, %v532_v34  ;;  %v572_v49 = vpop.f32.mrb[4].mxu0 }
 0x100   :  { %v573_v50 = vpop.f32.mrb[5].mxu0 }
 0x101   :  { %262 = vst [vmem:[#allocation2 + $0x1] sm:$0xff] %v254_v45  ;;  %v241_v51 = vadd.f32 %v696_v33, %v156_v47  ;;  %v574_v52 = vadd.f32 %v573_v50, %v572_v49  ;;  %398 = vmatprep.mubr.f32.mxu0 %v254_v45 }
 0x103   :  { %v255_v53 = vmax.f32 %v241_v51, 0.0  ;;  %v575_v54 = vpop.f32.mrb[6].mxu0  ;;  %v161_v55 = vadd.f32 %v574_v52, %v532_v34 }
 0x104   :  { %v576_v56 = vpop.f32.mrb[7].mxu0 }
 0x105   :  { %263 = vst [vmem:[#allocation2 + $0x9] sm:$0xff] %v255_v53  ;;  %v246_v57 = vadd.f32 %v245_v44, %v161_v55  ;;  %v577_v58 = vadd.f32 %v576_v56, %v575_v54 }
 0x107   :  { %v256_v59 = vmax.f32 %v246_v57, 0.0  ;;  %v166_v60 = vadd.f32 %v577_v58, %v532_v34 }
 0x108   :  { %v270_v61 = vld [vmem:[#allocation2] sm:$0xff] }
 0x109   :  { %264 = vst [vmem:[#allocation2 + $0x19] sm:$0xff] %v256_v59  ;;  %v251_v62 = vadd.f32 %v699_v41, %v166_v60  ;;  %399 = vmatmul.mubr.f32.vlgmr.msra.gmra.mrb[8].mxu0 %v270_v61 }
 0x10a   :  { %403 = vmatprep.mubr.f32.mxu0 %v255_v53 }
 0x10b   :  { %v257_v63 = vmax.f32 %v251_v62, 0.0 }
 0x10c   :  { %v278_v0 = vld [vmem:[#allocation2 + $0x2] sm:$0xff]  ;;  %v279_v2 = vld [vmem:[#allocation2 + $0xa] sm:$0xff] }
 0x10d   :  { %v271_v1 = vld [vmem:[#allocation2 + $0x8] sm:$0xff]  ;;  %265 = vst [vmem:[#allocation2 + $0x21] sm:$0xff] %v257_v63  ;;  %732 = vmatprep.mubr.f32.mxu1 %v278_v0 }
 0x10e   :  { %404 = vmatmul.mubr.f32.gmra.mrb[10].mxu0 %v271_v1  ;;  %733 = vmatmul.mubr.f32.vlgmr.msra.gmra.mrb[4].mxu1 %v279_v2 }
 0x10f   :  { %408 = vmatprep.mubr.f32.mxu0 %v256_v59 }
 0x110   :  { %v272_v3 = vld [vmem:[#allocation2 + $0x18] sm:$0xff] }
 0x112   :  { %409 = vmatmul.mubr.f32.gmra.mrb[12].mxu0 %v272_v3 }
 0x113   :  { %413 = vmatprep.mubr.f32.mxu0 %v257_v63 }
 0x114   :  { %v280_v4 = vld [vmem:[#allocation2 + $0x1a] sm:$0xff]  ;;  %v281_v6 = vld [vmem:[#allocation2 + $0x22] sm:$0xff] }
 0x115   :  { %v273_v5 = vld [vmem:[#allocation2 + $0x20] sm:$0xff]  ;;  %735 = vmatprep.mubr.f32.mxu1 %v280_v4 }
 0x116   :  { %414 = vmatmul.mubr.f32.gmra.mrb[14].mxu0 %v273_v5  ;;  %736 = vmatmul.mubr.f32.gmra.mrb[6].mxu1 %v281_v6 }
 0x1dc   :  { %v630_v7 = vpop.f32.mrb[8].mxu0 }
 0x1dd   :  { %v631_v8 = vpop.f32.mrb[9].mxu0 }
 0x1de   :  { %v632_v10 = vadd.f32 %v631_v8, %v630_v7 }
 0x1e0   :  { %v401_v12 = vadd.f32 %v632_v10, %v533_v9 }
 0x1e1   :  { %v633_v11 = vpop.f32.mrb[10].mxu0  ;;  %v734_v13 = vpop.f32.mrb[4].mxu1 }
 0x1e2   :  { %v634_v14 = vpop.f32.mrb[11].mxu0  ;;  %v485_v16 = vpop.f32.mrb[5].mxu1 }
 0x1e3   :  { %v635_v15 = vadd.f32 %v634_v14, %v633_v11  ;;  %v486_v17 = vadd.f32 %v485_v16, %v401_v12 }
 0x1e5   :  { %v406_v18 = vadd.f32 %v635_v15, %v533_v9  ;;  %v636_v19 = vpop.f32.mrb[12].mxu0  ;;  %v504_v20 = vadd.f32 %v486_v17, %v1028_v48 }
 0x1e6   :  { %v637_v21 = vpop.f32.mrb[13].mxu0 }
 0x1e7   :  { %v491_v22 = vadd.f32 %v734_v13, %v406_v18  ;;  %v638_v24 = vadd.f32 %v637_v21, %v636_v19  ;;  %v508_v25 = vmax.f32 %v504_v20, 0.0 }
 0x1e9   :  { %v505_v26 = vadd.f32 %v491_v22, %v1112_v23  ;;  %v639_v27 = vpop.f32.mrb[14].mxu0  ;;  %v411_v28 = vadd.f32 %v638_v24, %v533_v9  ;;  %512 = vst [vmem:[#allocation3] sm:$0xff] %v508_v25  ;;  %v737_v29 = vpop.f32.mrb[6].mxu1 }
 0x1ea   :  { %v640_v30 = vpop.f32.mrb[15].mxu0  ;;  %v495_v33 = vpop.f32.mrb[7].mxu1 }
 0x1eb   :  { %v509_v31 = vmax.f32 %v505_v26, 0.0  ;;  %v641_v32 = vadd.f32 %v640_v30, %v639_v27  ;;  %v496_v34 = vadd.f32 %v495_v33, %v411_v28 }
 0x1ed   :  { %513 = vst [vmem:[#allocation3 + $0x8] sm:$0xff] %v509_v31  ;;  %v416_v35 = vadd.f32 %v641_v32, %v533_v9  ;;  %v506_v37 = vadd.f32 %v496_v34, %v1145_v36 }
 0x1ef   :  { %v501_v48 = vadd.f32 %v737_v29, %v416_v35  ;;  %v510_v38 = vmax.f32 %v506_v37, 0.0 }
 0x1f1   :  { %v507_v39 = vadd.f32 %v501_v48, %v1169_v46  ;;  %514 = vst [vmem:[#allocation3 + $0x10] sm:$0xff] %v510_v38 }
 0x1f3   :  { %v511_v23 = vmax.f32 %v507_v39, 0.0 }
 0x1f5   :  { %515 = vst [vmem:[#allocation3 + $0x18] sm:$0xff] %v511_v23 }
 0x1f6   :  { %881 = shalt.err (!%p878_p4)
}
 0x1f7   :  { %s882_s0 = scalar_lea.hbm %s1285_s4, 512 }
 0x1f8   :  { %p883_p5 = scmp.ne.s32.totalorder %s1285_s4, %s882_s0  ;;  %p886_p6 = scmp.lt.u32.totalorder %s882_s0, %s1285_s4 }
 0x1fa   :  { %p888_p7 = pnand %p886_p6, %p883_p5 }
 0x1fc   :  { %891 = shalt.err (!%p888_p7)
}
 0x1fd   :  { %s896_s27 = smov 128   ;;  %s897_s28 = smov 8  }
 0x1fe   :  { %527 = dma.vmem_to_hbm [thread:$0]  %s522_s19, 512, %s1285_s4, [#allocation4], %s896_s27, %s896_s27, %s897_s28  }
 0x1ff   :  { %892 = dma.done.wait [#allocation4], 512  }
 0x200   :  { %893 = vsyncadd [#allocation4], 4294966784 }
 0x201   :  { %531 = vsyncpa [#allocation4], 1 }

</bundles_post_ra>
